<compile_context>
chip_gen: v6e
topology: v6e:2x2x1
jax: 0.10.0
libtpu: 0.0.40
codegen_flags: <defaults>
</compile_context>

<pallas_src>
import functools

import jax
import jax.numpy as jnp
from jax.experimental import pallas as pl
from jax.experimental.pallas import tpu as pltpu


def _round_up(x, m):
    return (x + m - 1) // m * m


def _stack_kernel(x_ref, w_ref, b_ref, o_ref, *, num_layers):
    """Fused MLP body.

    x_ref: (tm, Dp) bf16       w_ref: (L, Dp, Dp) bf16 (pre-transposed, K x N)
    b_ref: (L, 1, Dp) bf16     o_ref: (tm, Dp) bf16
    """
    h = x_ref[...]                                        # (tm, Dp) bf16
    for l in range(num_layers):                           # static unroll (L small)
        y = jnp.dot(h, w_ref[l], preferred_element_type=jnp.float32)
        y = y + b_ref[l].astype(jnp.float32)              # (1, Dp) broadcast, f32
        if l < num_layers - 1:
            h = jnp.maximum(y, 0.0).astype(x_ref.dtype)   # fused ReLU, bf16 feed
        else:
            o_ref[...] = y.astype(o_ref.dtype)            # no ReLU after last layer


def linear_stack_forward(x, params, *, compute_dtype=jnp.bfloat16, tm=None):
    """y = Sequential(Linear, ReLU, ..., Linear)(x), fused into one kernel."""
    M, in_f = x.shape
    L = len(params)
    out_f = params[-1][0].shape[0]
    itemsize = jnp.dtype(compute_dtype).itemsize

    # Common padded feature dim (lane-dense: multiple of 128).
    feat_dims = [in_f] + [w.shape[0] for (w, _) in params]
    Dp = max(_round_up(d, 128) for d in feat_dims)

    # Resident-weight VMEM footprint (weights + biases, single-buffered since
    # their block index never changes).
    resident_bytes = (L * Dp * Dp + L * Dp) * itemsize
    # TODO(synk): for hidden sizes where the full weight stack does not fit
    # VMEM (v7x has 64 MiB), switch to K-tiled weight streaming with an f32
    # accumulator instead of fully-resident weights.
    assert resident_bytes < 40 * 1024 * 1024, "weight stack too big to keep resident"

    # Row tile: full (8-aligned) batch when small, else the largest of
    # {512, 256, 128} whose double-buffered in/out tiles fit next to the
    # resident weights inside a conservative VMEM budget.
    if tm is None:
        if M <= 512:
            tm = _round_up(max(M, 8), 8)
        else:
            vmem_budget = 48 * 1024 * 1024
            tm = 128
            for cand in (512, 256, 128):
                tile_bytes = 2 * 2 * cand * Dp * itemsize   # 2 arrays x 2 buffers
                if resident_bytes + tile_bytes < vmem_budget:
                    tm = cand
                    break
    Mp = _round_up(M, tm)

    # Pack padded, pre-transposed weights (K, N layout) and zero-padded biases.
    w_stack = jnp.zeros((L, Dp, Dp), compute_dtype)
    b_stack = jnp.zeros((L, 1, Dp), compute_dtype)
    for l, (w, b) in enumerate(params):
        n, k = w.shape                                      # torch layout (out, in)
        w_stack = w_stack.at[l, :k, :n].set(w.T.astype(compute_dtype))
        b_stack = b_stack.at[l, 0, :n].set(b.astype(compute_dtype))

    # Zero-pad activations (rows to tm multiple, features to Dp).
    x_p = jnp.zeros((Mp, Dp), compute_dtype).at[:M, :in_f].set(
        x.astype(compute_dtype))

    kernel = functools.partial(_stack_kernel, num_layers=L)
    out_p = pl.pallas_call(
        kernel,
        out_shape=jax.ShapeDtypeStruct((Mp, Dp), compute_dtype),
        grid=(Mp // tm,),
        in_specs=[
            pl.BlockSpec((tm, Dp), lambda i: (i, 0)),        # row tile of acts
            pl.BlockSpec((L, Dp, Dp), lambda i: (0, 0, 0)),  # all weights resident
            pl.BlockSpec((L, 1, Dp), lambda i: (0, 0, 0)),   # all biases resident
        ],
        out_specs=pl.BlockSpec((tm, Dp), lambda i: (i, 0)),
        compiler_params=pltpu.CompilerParams(
            dimension_semantics=("parallel",),
            vmem_limit_bytes=96 * 1024 * 1024,
        ),
    )(x_p, w_stack, b_stack)

    return out_p[:M, :out_f].astype(x.dtype)


def init_linear_stack_params(key, num_layers, in_features, hidden_features,
                             out_features, dtype=jnp.float32):
    """Deterministic synthetic params mirroring torch.nn.Linear shapes/init."""
    layer_features = ([in_features]
                      + [hidden_features] * (num_layers - 1)
                      + [out_features])
    params = []
    for in_f, out_f in zip(layer_features[:-1], layer_features[1:]):
        key, kw, kb = jax.random.split(key, 3)
        bound = 1.0 / jnp.sqrt(in_f)
        w = jax.random.uniform(kw, (out_f, in_f), dtype, -bound, bound)
        b = jax.random.uniform(kb, (out_f,), dtype, -bound, bound)
        params.append((w, b))
    return params


def linear_stack_reference(x, params, compute_dtype=jnp.bfloat16):
    """Pure-JAX reference mirroring the kernel's mixed-precision semantics."""
    n = len(params)
    h = x.astype(compute_dtype)
    for idx, (w, b) in enumerate(params):
        y = jnp.dot(h, w.T.astype(compute_dtype),
                    preferred_element_type=jnp.float32)
        y = y + b.astype(compute_dtype).astype(jnp.float32)
        if idx < n - 1:
            h = jnp.maximum(y, 0.0).astype(compute_dtype)
        else:
            return y.astype(compute_dtype).astype(x.dtype)


if __name__ == "__main__":
    key = jax.random.PRNGKey(0)
    k_params, k_x = jax.random.split(key)

    num_layers = 3
    in_features = 16
    hidden_features = 32
    out_features = 8
    batch = 64

    params = init_linear_stack_params(
        k_params, num_layers, in_features, hidden_features, out_features)
    x = jax.random.normal(k_x, (batch, in_features), jnp.float32)

    out = linear_stack_forward(x, params)
    out = jax.block_until_ready(out)

    ref = linear_stack_reference(x, params)
    assert out.shape == (batch, out_features)
    assert jnp.allclose(out.astype(jnp.float32), ref.astype(jnp.float32),
                        atol=2e-2, rtol=2e-2), "kernel/reference mismatch"

    print("KERNEL_OK")
</pallas_src>

<mosaic_0001>
module attributes {stable_mosaic.version = 11 : i64} {
  func.func @_stack_kernel(%arg0: i32, %arg1: memref<64x128xbf16, #tpu.memory_space<vmem>>, %arg2: memref<3x128x128xbf16, #tpu.memory_space<vmem>>, %arg3: memref<3x1x128xbf16, #tpu.memory_space<vmem>>, %arg4: memref<64x128xbf16, #tpu.memory_space<vmem>>) attributes {dimension_semantics = [#tpu.dimension_semantics<parallel>], iteration_bounds = array<i64: 1>, scalar_prefetch = 0 : i64, scratch_operands = 0 : i64, tpu.core_type = #tpu.core_type<tc>, window_params = [{transform_indices = @transform_0, window_bounds = array<i64: 64, 128>}, {pipeline_mode = #tpu.pipeline_mode<synchronous>, transform_indices = @transform_1, window_bounds = array<i64: 3, 128, 128>}, {pipeline_mode = #tpu.pipeline_mode<synchronous>, transform_indices = @transform_2, window_bounds = array<i64: 3, 1, 128>}, {transform_indices = @transform_3, window_bounds = array<i64: 64, 128>}]} {
    %c0 = arith.constant 0 : index
    %c0_0 = arith.constant 0 : index
    %0 = vector.load %arg1[%c0, %c0_0] : memref<64x128xbf16, #tpu.memory_space<vmem>>, vector<64x128xbf16>
    %c0_1 = arith.constant 0 : index
    %c0_2 = arith.constant 0 : index
    %c0_3 = arith.constant 0 : index
    %1 = vector.load %arg2[%c0_1, %c0_2, %c0_3] : memref<3x128x128xbf16, #tpu.memory_space<vmem>>, vector<1x128x128xbf16>
    %2 = vector.shape_cast %1 : vector<1x128x128xbf16> to vector<128x128xbf16>
    %cst = arith.constant dense<0.000000e+00> : vector<64x128xf32>
    %3 = tpu.matmul %0, %2, %cst {dimension_numbers = #tpu.dot_dimension_numbers<[1], [0], [0], [1], [0, 0, 1, 1], [], []>} : vector<64x128xbf16>, vector<128x128xbf16>, vector<64x128xf32> -> vector<64x128xf32>
    %c0_4 = arith.constant 0 : index
    %c0_5 = arith.constant 0 : index
    %c0_6 = arith.constant 0 : index
    %4 = vector.load %arg3[%c0_4, %c0_5, %c0_6] : memref<3x1x128xbf16, #tpu.memory_space<vmem>>, vector<1x1x128xbf16>
    %5 = vector.shape_cast %4 : vector<1x1x128xbf16> to vector<1x128xbf16>
    %6 = arith.extf %5 : vector<1x128xbf16> to vector<1x128xf32>
    %7 = vector.broadcast %6 : vector<1x128xf32> to vector<64x128xf32>
    %8 = arith.addf %3, %7 : vector<64x128xf32>
    %cst_7 = arith.constant 0.000000e+00 : f32
    %9 = vector.broadcast %cst_7 : f32 to vector<64x128xf32>
    %10 = arith.maximumf %8, %9 : vector<64x128xf32>
    %11 = arith.truncf %10 : vector<64x128xf32> to vector<64x128xbf16>
    %c1 = arith.constant 1 : index
    %c0_8 = arith.constant 0 : index
    %c0_9 = arith.constant 0 : index
    %12 = vector.load %arg2[%c1, %c0_8, %c0_9] : memref<3x128x128xbf16, #tpu.memory_space<vmem>>, vector<1x128x128xbf16>
    %13 = vector.shape_cast %12 : vector<1x128x128xbf16> to vector<128x128xbf16>
    %cst_10 = arith.constant dense<0.000000e+00> : vector<64x128xf32>
    %14 = tpu.matmul %11, %13, %cst_10 {dimension_numbers = #tpu.dot_dimension_numbers<[1], [0], [0], [1], [0, 0, 1, 1], [], []>} : vector<64x128xbf16>, vector<128x128xbf16>, vector<64x128xf32> -> vector<64x128xf32>
    %c1_11 = arith.constant 1 : index
    %c0_12 = arith.constant 0 : index
    %c0_13 = arith.constant 0 : index
    %15 = vector.load %arg3[%c1_11, %c0_12, %c0_13] : memref<3x1x128xbf16, #tpu.memory_space<vmem>>, vector<1x1x128xbf16>
    %16 = vector.shape_cast %15 : vector<1x1x128xbf16> to vector<1x128xbf16>
    %17 = arith.extf %16 : vector<1x128xbf16> to vector<1x128xf32>
    %18 = vector.broadcast %17 : vector<1x128xf32> to vector<64x128xf32>
    %19 = arith.addf %14, %18 : vector<64x128xf32>
    %cst_14 = arith.constant 0.000000e+00 : f32
    %20 = vector.broadcast %cst_14 : f32 to vector<64x128xf32>
    %21 = arith.maximumf %19, %20 : vector<64x128xf32>
    %22 = arith.truncf %21 : vector<64x128xf32> to vector<64x128xbf16>
    %c2 = arith.constant 2 : index
    %c0_15 = arith.constant 0 : index
    %c0_16 = arith.constant 0 : index
    %23 = vector.load %arg2[%c2, %c0_15, %c0_16] : memref<3x128x128xbf16, #tpu.memory_space<vmem>>, vector<1x128x128xbf16>
    %24 = vector.shape_cast %23 : vector<1x128x128xbf16> to vector<128x128xbf16>
    %cst_17 = arith.constant dense<0.000000e+00> : vector<64x128xf32>
    %25 = tpu.matmul %22, %24, %cst_17 {dimension_numbers = #tpu.dot_dimension_numbers<[1], [0], [0], [1], [0, 0, 1, 1], [], []>} : vector<64x128xbf16>, vector<128x128xbf16>, vector<64x128xf32> -> vector<64x128xf32>
    %c2_18 = arith.constant 2 : index
    %c0_19 = arith.constant 0 : index
    %c0_20 = arith.constant 0 : index
    %26 = vector.load %arg3[%c2_18, %c0_19, %c0_20] : memref<3x1x128xbf16, #tpu.memory_space<vmem>>, vector<1x1x128xbf16>
    %27 = vector.shape_cast %26 : vector<1x1x128xbf16> to vector<1x128xbf16>
    %28 = arith.extf %27 : vector<1x128xbf16> to vector<1x128xf32>
    %29 = vector.broadcast %28 : vector<1x128xf32> to vector<64x128xf32>
    %30 = arith.addf %25, %29 : vector<64x128xf32>
    %31 = arith.truncf %30 : vector<64x128xf32> to vector<64x128xbf16>
    %c0_21 = arith.constant 0 : index
    %c0_22 = arith.constant 0 : index
    %32 = vector.load %arg4[%c0_21, %c0_22] : memref<64x128xbf16, #tpu.memory_space<vmem>>, vector<64x128xbf16>
    tpu.vector_store %arg4[%c0_21, %c0_22], %31 {strides = array<i32>} : memref<64x128xbf16, #tpu.memory_space<vmem>>, vector<64x128xbf16>,
    return
  }
  func.func @transform_0(%arg0: i32) -> (i32, i32) {
    %c0_i32 = arith.constant 0 : i32
    %c0_i32_0 = arith.constant 0 : i32
    return %arg0, %c0_i32 : i32, i32
  }
  func.func @transform_1(%arg0: i32) -> (i32, i32, i32) {
    %c0_i32 = arith.constant 0 : i32
    %c0_i32_0 = arith.constant 0 : i32
    %c0_i32_1 = arith.constant 0 : i32
    %c0_i32_2 = arith.constant 0 : i32
    return %c0_i32, %c0_i32_0, %c0_i32_1 : i32, i32, i32
  }
  func.func @transform_2(%arg0: i32) -> (i32, i32, i32) {
    %c0_i32 = arith.constant 0 : i32
    %c0_i32_0 = arith.constant 0 : i32
    %c0_i32_1 = arith.constant 0 : i32
    %c0_i32_2 = arith.constant 0 : i32
    return %c0_i32, %c0_i32_0, %c0_i32_1 : i32, i32, i32
  }
  func.func @transform_3(%arg0: i32) -> (i32, i32) {
    %c0_i32 = arith.constant 0 : i32
    %c0_i32_0 = arith.constant 0 : i32
    return %arg0, %c0_i32 : i32, i32
  }
}

</mosaic_0001>

<bundles_post_ra>
// kernel: tpu_custom_call.1
= control target key start
LH: loop header
LB: loop body
LE: loop exit
PB: predicated region body
PF: predicated region fallthrough
CT: control target
= control target key end

     0   :  { %8 = vsyncpa [#allocation3], 0  ;;  %s916_s0 = inlined_call_operand.hbm [shape: bf16[64,128], index: 0, kind: input, shape index: {}]   ;;  %s917_s1 = inlined_call_operand.hbm [shape: bf16[3,128,128], index: 1, kind: input, shape index: {}]   ;;  %s918_s2 = inlined_call_operand.vmem [shape: bf16[3,1,128], index: 2, kind: input, shape index: {}]   ;;  %s919_s3 = inlined_call_operand.hbm [shape: bf16[64,128], index: 3, kind: output, shape index: {}]  }
   0x1   :  { %9 = vsyncpa [#allocation6], 0 }
   0x2   :  { %10 = vsyncpa [#allocation4], 0  ;;  %s859_s12 = smov [#allocation2]  }
   0x3   :  { %s16_s13 = sshll.u32 %s859_s12, 4  ;;  %s17_s13 = int_to_ptr.vmem [resolvable:$true] %s16_s13 }
   0x4   :  { %s801_s14 = scalar_lea.vmem %s17_s13, 512  ;;  %p806_p1 = scmp.lt.s32.totalorder %s17_s13, %s17_s13 }
   0x5   :  { %p802_p0 = scmp.ne.s32.totalorder %s17_s13, %s801_s14  ;;  %p807_p2 = scmp.lt.s32.totalorder %s801_s14, %s801_s14 }
   0x7   :  { %p808_p3 = por %p807_p2, %p806_p1 }
   0x9   :  { %p809_p4 = pnand %p808_p3, %p802_p0 }
   0xb   :  { %812 = shalt.err (!%p809_p4)
}
   0xc   :  { %s860_s15 = smov 64   ;;  %s861_s16 = smov 4  }
   0xd   :  { %22 = dma.hbm_to_vmem [thread:$0]  %s916_s0, 512, %s17_s13, [#allocation3], %s860_s15, %s860_s15, %s861_s16  }
   0xe   :  { %s862_s19 = smov [#allocation5]  }
   0xf   :  { %s28_s20 = sshll.u32 %s862_s19, 4  ;;  %s29_s20 = int_to_ptr.vmem [resolvable:$true] %s28_s20 }
  0x10   :  { %s821_s21 = scalar_lea.vmem %s29_s20, 3072  ;;  %p826_p6 = scmp.lt.s32.totalorder %s29_s20, %s29_s20 }
  0x11   :  { %p822_p5 = scmp.ne.s32.totalorder %s29_s20, %s821_s21  ;;  %p827_p7 = scmp.lt.s32.totalorder %s821_s21, %s821_s21 }
  0x13   :  { %p828_p8 = por %p827_p7, %p826_p6 }
  0x15   :  { %p829_p9 = pnand %p828_p8, %p822_p5 }
  0x17   :  { %832 = shalt.err (!%p829_p9)
}
  0x18   :  { %34 = dma.hbm_to_vmem [thread:$0]  %s917_s1, 3072, %s29_s20, [#allocation6], %s860_s15, %s860_s15, %s861_s16  }
  0x19   :  { %853 = dma.done.wait [#allocation3], 512  }
  0x1a   :  { %854 = vsyncadd [#allocation3], 4294966784 }
  0x1b   :  { %855 = dma.done.wait [#allocation6], 3072  }
  0x1c   :  { %856 = vsyncadd [#allocation6], 4294964224  ;;  %v765_v0 = vld [vmem:[#allocation5 + $0x38] sm:$0xff]   ;;  %v766_v1 = vld [vmem:[#allocation5 + $0x30] sm:$0xff]   ;;  %v70_v25 = vlaneseq }
  0x1d   :  { %672 = vmatprep.subr.bf16.mxu0 %v765_v0  ;;  %v767_v2 = vld [vmem:[#allocation5 + $0x28] sm:$0xff]   ;;  %v768_v3 = vld [vmem:[#allocation5 + $0x20] sm:$0xff]   ;;  %v769_v5 = vld [vmem:[#allocation5 + $0x18] sm:$0xff]  }
  0x1e   :  { %673 = vmatpush3.bf16.msra.mxu0 %v765_v0  ;;  %v773_v4 = vld [vmem:[#allocation2] sm:$0xff]   ;;  %v777_v6 = vld [vmem:[#allocation5 + $0x78] sm:$0xff]   ;;  %v778_v7 = vld [vmem:[#allocation5 + $0x70] sm:$0xff]   ;;  %v71_v26 = vshrl.u32 %v70_v25, 7 }
  0x1f   :  { %674 = vmatprep.subr.bf16.mxu0 %v766_v1  ;;  %688 = vmatprep.mubr.bf16.mxu0 %v773_v4  ;;  %v770_v8 = vld [vmem:[#allocation5 + $0x10] sm:$0xff]   ;;  %v779_v9 = vld [vmem:[#allocation5 + $0x68] sm:$0xff]   ;;  %v780_v11 = vld [vmem:[#allocation5 + $0x60] sm:$0xff]  }
  0x20   :  { %696 = vmatprep.subr.bf16.mxu1 %v777_v6  ;;  %v771_v10 = vld [vmem:[#allocation5 + $0x8] sm:$0xff]   ;;  %v772_v12 = vld [vmem:[#allocation5] sm:$0xff]   ;;  %v781_v13 = vld [vmem:[#allocation5 + $0x58] sm:$0xff]   ;;  %v899_v29 = vsub.s32 0, %v71_v26 }
  0x21   :  { %697 = vmatpush3.bf16.msra.mxu1 %v777_v6  ;;  %v774_v14 = vld [vmem:[#allocation2 + $0x8] sm:$0xff]   ;;  %v775_v15 = vld [vmem:[#allocation2 + $0x10] sm:$0xff]   ;;  %v776_v16 = vld [vmem:[#allocation2 + $0x18] sm:$0xff]  }
  0x22   :  { %675 = vmatpush3.bf16.msra.mxu0 %v766_v1  ;;  %698 = vmatprep.subr.bf16.mxu1 %v778_v7  ;;  %v782_v17 = vld [vmem:[#allocation5 + $0x50] sm:$0xff]   ;;  %v783_v18 = vld [vmem:[#allocation5 + $0x48] sm:$0xff]   ;;  %v784_v19 = vld [vmem:[#allocation5 + $0x40] sm:$0xff]  }
  0x23   :  { %676 = vmatprep.subr.bf16.mxu0 %v767_v2  ;;  %v785_v20 = vld [vmem:[#allocation5 + $0xb8] sm:$0xff]   ;;  %v786_v21 = vld [vmem:[#allocation5 + $0xb0] sm:$0xff]   ;;  %v787_v22 = vld [vmem:[#allocation5 + $0xa8] sm:$0xff]  }
  0x24   :  { %v788_v23 = vld [vmem:[#allocation5 + $0xa0] sm:$0xff]   ;;  %v789_v24 = vld [vmem:[#allocation5 + $0x98] sm:$0xff]   ;;  %v790_v59 = vld [vmem:[#allocation5 + $0x90] sm:$0xff]  }
  0x25   :  { %699 = vmatpush3.bf16.msra.mxu1 %v778_v7  ;;  %v68_v27 = vld [vmem:[%s918_s2] sm:$0x1]  ;;  %v791_v60 = vld [vmem:[#allocation5 + $0x88] sm:$0xff]   ;;  %v579_v62 = vld [vmem:[%s918_s2 + $0x1] sm:$0x1] }
  0x26   :  { %677 = vmatpush3.bf16.msra.mxu0 %v767_v2  ;;  %700 = vmatprep.subr.bf16.mxu1 %v779_v9  ;;  %v69_v28 = vunpack.c.l.bf16 %v68_v27  ;;  %v792_v61 = vld [vmem:[#allocation5 + $0x80] sm:$0xff]   ;;  %v242_v63 = vunpack.c.l.bf16 %v579_v62 }
  0x27   :  { %678 = vmatprep.subr.bf16.mxu0 %v768_v3 }
  0x28   :  { %v73_v31 = vrot.slane %v69_v28, %v899_v29  ;;  %v246_v1 = vrot.slane %v242_v63, %v899_v29 }
  0x29   :  { %701 = vmatpush3.bf16.msra.mxu1 %v779_v9 }
  0x2a   :  { %679 = vmatpush3.bf16.msra.mxu0 %v768_v3  ;;  %702 = vmatprep.subr.bf16.mxu1 %v780_v11 }
  0x2b   :  { %680 = vmatprep.subr.bf16.mxu0 %v769_v5 }
  0x2d   :  { %703 = vmatpush3.bf16.msra.mxu1 %v780_v11 }
  0x2e   :  { %681 = vmatpush3.bf16.msra.mxu0 %v769_v5  ;;  %704 = vmatprep.subr.bf16.mxu1 %v781_v13 }
  0x2f   :  { %682 = vmatprep.subr.bf16.mxu0 %v770_v8 }
  0x31   :  { %705 = vmatpush3.bf16.msra.mxu1 %v781_v13 }
  0x32   :  { %683 = vmatpush3.bf16.msra.mxu0 %v770_v8  ;;  %706 = vmatprep.subr.bf16.mxu1 %v782_v17 }
  0x33   :  { %684 = vmatprep.subr.bf16.mxu0 %v771_v10 }
  0x35   :  { %707 = vmatpush3.bf16.msra.mxu1 %v782_v17 }
  0x36   :  { %685 = vmatpush3.bf16.msra.mxu0 %v771_v10  ;;  %708 = vmatprep.subr.bf16.mxu1 %v783_v18 }
  0x37   :  { %686 = vmatprep.subr.bf16.mxu0 %v772_v12 }
  0x39   :  { %709 = vmatpush3.bf16.msra.mxu1 %v783_v18 }
  0x3a   :  { %687 = vmatpush3.bf16.msra.mxu0 %v772_v12  ;;  %710 = vmatprep.subr.bf16.mxu1 %v784_v19 }
  0x3b   :  { %720 = vmatprep.subr.bf16.mxu0 %v785_v20 }
  0x3d   :  { %689 = vmatmul.mubr.bf16.vlgmr.msra.gmra.mxu0 %v774_v14  ;;  %711 = vmatpush3.bf16.msra.mxu1 %v784_v19 }
  0x3e   :  { %692 = vmatprep.mubr.bf16.mxu0 %v775_v15  ;;  %744 = vmatprep.subr.bf16.mxu1 %v785_v20 }
  0x3f   :  { %721 = vmatpush3.bf16.msra.mxu0 %v785_v20 }
  0x40   :  { %722 = vmatprep.subr.bf16.mxu0 %v786_v21 }
  0x43   :  { %723 = vmatpush3.bf16.msra.mxu0 %v786_v21 }
  0x44   :  { %724 = vmatprep.subr.bf16.mxu0 %v787_v22 }
  0x45   :  { %693 = vmatmul.mubr.bf16.gmra.mxu0 %v776_v16 }
  0x47   :  { %725 = vmatpush3.bf16.msra.mxu0 %v787_v22 }
  0x48   :  { %726 = vmatprep.subr.bf16.mxu0 %v788_v23 }
  0x4b   :  { %727 = vmatpush3.bf16.msra.mxu0 %v788_v23 }
  0x4c   :  { %728 = vmatprep.subr.bf16.mxu0 %v789_v24 }
  0x4f   :  { %729 = vmatpush3.bf16.msra.mxu0 %v789_v24 }
  0x50   :  { %730 = vmatprep.subr.bf16.mxu0 %v790_v59 }
  0x53   :  { %731 = vmatpush3.bf16.msra.mxu0 %v790_v59 }
  0x54   :  { %732 = vmatprep.subr.bf16.mxu0 %v791_v60 }
  0x57   :  { %733 = vmatpush3.bf16.msra.mxu0 %v791_v60 }
  0x58   :  { %734 = vmatprep.subr.bf16.mxu0 %v792_v61 }
  0x5b   :  { %735 = vmatpush3.bf16.msra.mxu0 %v792_v61 }
  0xfd   :  { %v690_v30 = vpop.f32.mrf.mxu0 }
  0xfe   :  { %v189_v36 = vadd.f32 %v690_v30, %v73_v31  ;;  %v588_v30 = vld [vmem:[%s918_s2 + $0x2] sm:$0x1]  ;;  %s863_s2 = smov [#allocation7]  }
  0xff   :  { %v180_v32 = vpop.f32.mrf.mxu0  ;;  %s554_s28 = sshll.u32 %s863_s2, 4  ;;  %s555_s28 = int_to_ptr.vmem [resolvable:$true] %s554_s28 }
 0x100   :  { %v181_v34 = vadd.f32 %v180_v32, %v73_v31  ;;  %v213_v43 = vmax.f32 %v189_v36, 0.0  ;;  %s833_s29 = scalar_lea.vmem %s555_s28, 512  ;;  %p838_p11 = scmp.lt.s32.totalorder %s555_s28, %s555_s28 }
 0x101   :  { %v691_v33 = vpop.f32.mrf.mxu0  ;;  %p834_p10 = scmp.ne.s32.totalorder %s555_s28, %s833_s29  ;;  %p839_p12 = scmp.lt.s32.totalorder %s833_s29, %s833_s29 }
 0x102   :  { %v192_v35 = vadd.f32 %v691_v33, %v73_v31  ;;  %v211_v41 = vmax.f32 %v181_v34, 0.0 }
 0x103   :  { %v183_v37 = vpop.f32.mrf.mxu0  ;;  %p840_p13 = por %p839_p12, %p838_p11 }
 0x104   :  { %v184_v38 = vadd.f32 %v183_v37, %v73_v31  ;;  %v214_v39 = vmax.f32 %v192_v35, 0.0 }
 0x105   :  { %v694_v40 = vpop.f32.mrf.mxu0  ;;  %p841_p0 = pnand %p840_p13, %p834_p10 }
 0x106   :  { %v212_v42 = vmax.f32 %v184_v38, 0.0  ;;  %v220_v46 = vpack.c.bf16 %v214_v39, %v213_v43  ;;  %v205_v50 = vadd.f32 %v694_v40, %v73_v31 }
 0x107   :  { %v196_v44 = vpop.f32.mrf.mxu0 }
 0x108   :  { %v219_v45 = vpack.c.bf16 %v212_v42, %v211_v41  ;;  %v197_v48 = vadd.f32 %v196_v44, %v73_v31  ;;  %v217_v56 = vmax.f32 %v205_v50, 0.0 }
 0x109   :  { %v695_v47 = vpop.f32.mrf.mxu0 }
 0x10a   :  { %v208_v49 = vadd.f32 %v695_v47, %v73_v31  ;;  %712 = vmatprep.mubr.bf16.mxu1 %v219_v45  ;;  %v215_v54 = vmax.f32 %v197_v48, 0.0 }
 0x10b   :  { %v199_v51 = vpop.f32.mrf.mxu0  ;;  %713 = vmatmul.mubr.bf16.vlgmr.msra.gmra.mxu1 %v220_v46 }
 0x10c   :  { %v200_v52 = vadd.f32 %v199_v51, %v73_v31  ;;  %752 = vmatpush3.bf16.msra.mxu1 %v785_v20  ;;  %v218_v53 = vmax.f32 %v208_v49, 0.0  ;;  %v391_v31 = vunpack.c.l.bf16 %v588_v30 }
 0x10d   :  { %745 = vmatprep.subr.bf16.mxu1 %v786_v21 }
 0x10e   :  { %v216_v55 = vmax.f32 %v200_v52, 0.0  ;;  %v222_v58 = vpack.c.bf16 %v218_v53, %v217_v56  ;;  %v395_v33 = vrot.slane %v391_v31, %v899_v29 }
 0x110   :  { %v221_v57 = vpack.c.bf16 %v216_v55, %v215_v54  ;;  %753 = vmatpush3.bf16.msra.mxu1 %v786_v21 }
 0x111   :  { %746 = vmatprep.subr.bf16.mxu1 %v787_v22 }
 0x112   :  { %716 = vmatprep.mubr.bf16.mxu1 %v221_v57 }
 0x113   :  { %717 = vmatmul.mubr.bf16.gmra.mxu1 %v222_v58 }
 0x114   :  { %754 = vmatpush3.bf16.msra.mxu1 %v787_v22 }
 0x115   :  { %747 = vmatprep.subr.bf16.mxu1 %v788_v23 }
 0x118   :  { %755 = vmatpush3.bf16.msra.mxu1 %v788_v23 }
 0x119   :  { %748 = vmatprep.subr.bf16.mxu1 %v789_v24 }
 0x11c   :  { %756 = vmatpush3.bf16.msra.mxu1 %v789_v24 }
 0x11d   :  { %749 = vmatprep.subr.bf16.mxu1 %v790_v59 }
 0x120   :  { %757 = vmatpush3.bf16.msra.mxu1 %v790_v59 }
 0x121   :  { %750 = vmatprep.subr.bf16.mxu1 %v791_v60 }
 0x124   :  { %758 = vmatpush3.bf16.msra.mxu1 %v791_v60 }
 0x125   :  { %751 = vmatprep.subr.bf16.mxu1 %v792_v61 }
 0x128   :  { %759 = vmatpush3.bf16.msra.mxu1 %v792_v61 }
 0x1cb   :  { %v714_v0 = vpop.f32.mrf.mxu1 }
 0x1cc   :  { %v338_v6 = vadd.f32 %v714_v0, %v246_v1 }
 0x1cd   :  { %v329_v2 = vpop.f32.mrf.mxu1 }
 0x1ce   :  { %v330_v4 = vadd.f32 %v329_v2, %v246_v1  ;;  %v362_v13 = vmax.f32 %v338_v6, 0.0 }
 0x1cf   :  { %v715_v3 = vpop.f32.mrf.mxu1 }
 0x1d0   :  { %v341_v5 = vadd.f32 %v715_v3, %v246_v1  ;;  %v360_v11 = vmax.f32 %v330_v4, 0.0 }
 0x1d1   :  { %v332_v7 = vpop.f32.mrf.mxu1 }
 0x1d2   :  { %v333_v8 = vadd.f32 %v332_v7, %v246_v1  ;;  %v363_v9 = vmax.f32 %v341_v5, 0.0 }
 0x1d3   :  { %v718_v10 = vpop.f32.mrf.mxu1 }
 0x1d4   :  { %v361_v12 = vmax.f32 %v333_v8, 0.0  ;;  %v369_v16 = vpack.c.bf16 %v363_v9, %v362_v13  ;;  %v354_v20 = vadd.f32 %v718_v10, %v246_v1 }
 0x1d5   :  { %v345_v14 = vpop.f32.mrf.mxu1 }
 0x1d6   :  { %v368_v15 = vpack.c.bf16 %v361_v12, %v360_v11  ;;  %v346_v18 = vadd.f32 %v345_v14, %v246_v1  ;;  %v366_v26 = vmax.f32 %v354_v20, 0.0 }
 0x1d7   :  { %v719_v17 = vpop.f32.mrf.mxu1 }
 0x1d8   :  { %v357_v19 = vadd.f32 %v719_v17, %v246_v1  ;;  %736 = vmatprep.mubr.bf16.mxu0 %v368_v15  ;;  %v364_v24 = vmax.f32 %v346_v18, 0.0 }
 0x1d9   :  { %v348_v21 = vpop.f32.mrf.mxu1  ;;  %737 = vmatmul.mubr.bf16.vlgmr.msra.gmra.mxu0 %v369_v16 }
 0x1da   :  { %v349_v22 = vadd.f32 %v348_v21, %v246_v1  ;;  %v367_v23 = vmax.f32 %v357_v19, 0.0 }
 0x1dc   :  { %v365_v25 = vmax.f32 %v349_v22, 0.0  ;;  %v371_v28 = vpack.c.bf16 %v367_v23, %v366_v26 }
 0x1de   :  { %v370_v27 = vpack.c.bf16 %v365_v25, %v364_v24 }
 0x1e0   :  { %740 = vmatprep.mubr.bf16.mxu1 %v370_v27 }
 0x1e1   :  { %741 = vmatmul.mubr.bf16.vlgmr.msra.gmra.mxu1 %v371_v28 }
 0x299   :  { %v738_v32 = vpop.f32.mrf.mxu0 }
 0x29a   :  { %v487_v36 = vadd.f32 %v738_v32, %v395_v33 }
 0x29b   :  { %v478_v34 = vpop.f32.mrf.mxu0 }
 0x29c   :  { %v479_v39 = vadd.f32 %v478_v34, %v395_v33 }
 0x29d   :  { %v739_v35 = vpop.f32.mrf.mxu0 }
 0x29e   :  { %v490_v37 = vadd.f32 %v739_v35, %v395_v33 }
 0x29f   :  { %v481_v38 = vpop.f32.mrf.mxu0 }
 0x2a0   :  { %v621_v40 = vpack.c.bf16 %v490_v37, %v487_v36  ;;  %v482_v41 = vadd.f32 %v481_v38, %v395_v33 }
 0x2a1   :  { %v742_v42 = vpop.f32.mrf.mxu1 }
 0x2a2   :  { %633 = vst [vmem:[#allocation7 + $0x8] sm:$0xff] %v621_v40   ;;  %v616_v43 = vpack.c.bf16 %v482_v41, %v479_v39  ;;  %v503_v46 = vadd.f32 %v742_v42, %v395_v33 }
 0x2a3   :  { %v494_v44 = vpop.f32.mrf.mxu1 }
 0x2a4   :  { %617 = vst [vmem:[#allocation7] sm:$0xff] %v616_v43   ;;  %v495_v29 = vadd.f32 %v494_v44, %v395_v33 }
 0x2a5   :  { %v743_v45 = vpop.f32.mrf.mxu1 }
 0x2a6   :  { %v506_v47 = vadd.f32 %v743_v45, %v395_v33 }
 0x2a7   :  { %v497_v48 = vpop.f32.mrf.mxu1 }
 0x2a8   :  { %v631_v49 = vpack.c.bf16 %v506_v47, %v503_v46  ;;  %v498_v50 = vadd.f32 %v497_v48, %v395_v33 }
 0x2aa   :  { %635 = vst [vmem:[#allocation7 + $0x18] sm:$0xff] %v631_v49   ;;  %v626_v51 = vpack.c.bf16 %v498_v50, %v495_v29 }
 0x2ac   :  { %634 = vst [vmem:[#allocation7 + $0x10] sm:$0xff] %v626_v51  }
 0x2ad   :  { %844 = shalt.err (!%p841_p0)
}
 0x2ae   :  { %560 = dma.vmem_to_hbm [thread:$0]  %s555_s28, 512, %s919_s3, [#allocation4], %s860_s15, %s860_s15, %s861_s16  }
 0x2af   :  { %857 = dma.done.wait [#allocation4], 512  }
 0x2b0   :  { %858 = vsyncadd [#allocation4], 4294966784 }
 0x2b1   :  { %564 = vsyncpa [#allocation3], 1 }
 0x2b2   :  { %565 = vsyncpa [#allocation6], 1 }
 0x2b3   :  { %566 = vsyncpa [#allocation4], 1 }

</bundles_post_ra>
